<compile_context>
chip_gen: v6e
topology: v6e:2x2x1
jax: 0.10.0
libtpu: 0.0.40
codegen_flags: <defaults>
</compile_context>

<pallas_src>
import jax
import jax.numpy as jnp
from jax.experimental import pallas as pl
from jax.experimental.pallas import tpu as pltpu


# ----------------------------- fused Pallas kernel ------------------------------

def _fused_model_kernel(x_ref, p_ref, out_ref):
    """Single-invocation fused convT -> BN -> conv -> convT.

    x_ref   : (4,4)  f32 VMEM  - input plane
    p_ref   : (22,)  f32 SMEM  - packed params: wt[9] | wc[9] | bt | bc | gamma | beta
    out_ref : (8,128) f32 VMEM - lane-dense output slab, result (6,6) at [0:6,0:6], zeros elsewhere
    """
    f32 = jnp.float32

    # ---- scalar parameters (each SMEM element read exactly once; convT taps pre-flipped) ----
    wt_f = [[p_ref[3 * (2 - a) + (2 - b)] for b in range(3)] for a in range(3)]  # flipped convT taps
    wc = [[p_ref[9 + 3 * a + b] for b in range(3)] for a in range(3)]            # conv taps (no flip)
    bt = p_ref[18]
    bc = p_ref[19]
    gamma = p_ref[20]
    beta = p_ref[21]

    # ---- static halo masks (valid-output regions) ----
    row = jax.lax.broadcasted_iota(jnp.int32, (8, 128), 0)
    col = jax.lax.broadcasted_iota(jnp.int32, (8, 128), 1)
    mask5 = (row < 5) & (col < 5)   # 5x5 planes (v1, v2, v3)
    mask6 = (row < 6) & (col < 6)   # 6x6 plane  (v4)

    def conv3x3(slab, taps, bias, mask):
        # out[i,j] = sum_{a,b} taps[a][b] * slab[i+a-1, j+b-1]   (zero halo via the slab's zero
        # surroundings + circular roll wrapping onto zero rows/cols), then mask + bias.
        acc = None
        for a in range(3):
            rs = slab if a == 1 else pltpu.roll(slab, (1 - a) % 8, 0)     # sublane shift (XLU)
            for b in range(3):
                sh = rs if b == 1 else pltpu.roll(rs, (1 - b) % 128, 1)   # lane shift (XLU)
                term = taps[a][b] * sh                                     # VPU FMA chain
                acc = term if acc is None else acc + term
        return jnp.where(mask, acc + bias, 0.0)

    # ---- embed x (4,4) into a zeroed lane-dense slab (staged once through out_ref; out_ref is
    #      fully overwritten at the end, so no extra scratch allocation is needed) ----
    out_ref[...] = jnp.zeros((8, 128), f32)
    out_ref[0:4, 0:4] = x_ref[...]
    xs = out_ref[...]

    # ---- Stage 1: ConvTranspose2d(3x3, s=1, p=1, output_padding=1): (4,4) -> (5,5) ----
    v1 = conv3x3(xs, wt_f, bt, mask5)

    # ---- Stage 2: BatchNorm2d (training: batch mean, biased variance, eps=1e-5) ----
    inv_n = f32(1.0 / 25.0)
    s1 = jnp.sum(v1)            # independent reductions -> can overlap
    s2 = jnp.sum(v1 * v1)
    mean = s1 * inv_n
    var = s2 * inv_n - mean * mean
    scale = jax.lax.rsqrt(var + 1e-5) * gamma
    shift = beta - mean * scale
    v2 = jnp.where(mask5, v1 * scale + shift, 0.0)

    # ---- Stage 3: Conv2d(3x3, s=1, p=1): (5,5) -> (5,5) ----
    v3 = conv3x3(v2, wc, bc, mask5)

    # ---- Stage 4: same ConvTranspose2d: (5,5) -> (6,6) ----
    v4 = conv3x3(v3, wt_f, bt, mask6)

    # ---- single unmasked lane-dense store of the whole slab ----
    out_ref[...] = v4


# ------------------------------ wrapper -----------------------------------

def _model_forward(x_nchw, params):
    x4 = x_nchw.reshape(4, 4)   # (1,1,4,4) -> (4,4): pure metadata (bitcast), no pad fusion

    out_slab = pl.pallas_call(
        _fused_model_kernel,
        out_shape=jax.ShapeDtypeStruct((8, 128), jnp.float32),
        in_specs=[
            pl.BlockSpec(memory_space=pltpu.MemorySpace.VMEM),   # x (4,4), full array
            pl.BlockSpec(memory_space=pltpu.MemorySpace.SMEM),   # packed params (22,)
        ],
        out_specs=pl.BlockSpec(memory_space=pltpu.MemorySpace.VMEM),
    )(x4, params)

    return out_slab[:6, :6].reshape(1, 1, 6, 6)   # back to NCHW (1,1,6,6)


model_forward = jax.jit(_model_forward)


# -------------------------------- driver ------------------------------------

if __name__ == "__main__":
    key = jax.random.PRNGKey(0)
    k1, k2, k3, k4, k5 = jax.random.split(key, 5)

    # input: (1, 1, 4, 4) like torch.randn(1, 1, 4, 4)
    x1 = jax.random.normal(k1, (1, 1, 4, 4), jnp.float32)

    # deterministic parameter init (uniform +/- 1/3 ~ fan_in=9 default scale)
    wt = jax.random.uniform(k2, (3, 3), jnp.float32, -1.0 / 3.0, 1.0 / 3.0)   # conv_transpose weight (spatial)
    bt = jax.random.uniform(k3, (), jnp.float32, -1.0 / 3.0, 1.0 / 3.0)       # conv_transpose bias
    wc = jax.random.uniform(k4, (3, 3), jnp.float32, -1.0 / 3.0, 1.0 / 3.0)   # conv weight (spatial)
    bc = jax.random.uniform(k5, (), jnp.float32, -1.0 / 3.0, 1.0 / 3.0)       # conv bias
    gamma = jnp.float32(1.0)   # BatchNorm2d default weight
    beta = jnp.float32(0.0)    # BatchNorm2d default bias

    # pack params once, outside jit: wt[9] | wc[9] | bt | bc | gamma | beta  -> (22,) f32
    params = jnp.concatenate(
        [wt.reshape(-1), wc.reshape(-1), jnp.stack([bt, bc, gamma, beta])]
    ).astype(jnp.float32)

    out = model_forward(x1, params)
    jax.block_until_ready(out)
    assert out.shape == (1, 1, 6, 6), out.shape
    assert bool(jnp.all(jnp.isfinite(out)))
    print("KERNEL_OK")
</pallas_src>

<mosaic_0001>
module attributes {stable_mosaic.version = 11 : i64} {
  func.func @_fused_model_kernel(%arg0: memref<4x4xf32, #tpu.memory_space<vmem>>, %arg1: memref<22xf32, #tpu.memory_space<smem>>, %arg2: memref<8x128xf32, #tpu.memory_space<vmem>>) attributes {dimension_semantics = [], scalar_prefetch = 0 : i64, scratch_operands = 0 : i64, tpu.core_type = #tpu.core_type<tc>} {
    %c8 = arith.constant 8 : index
    %0 = memref.load %arg1[%c8] : memref<22xf32, #tpu.memory_space<smem>>
    %c7 = arith.constant 7 : index
    %1 = memref.load %arg1[%c7] : memref<22xf32, #tpu.memory_space<smem>>
    %c6 = arith.constant 6 : index
    %2 = memref.load %arg1[%c6] : memref<22xf32, #tpu.memory_space<smem>>
    %c5 = arith.constant 5 : index
    %3 = memref.load %arg1[%c5] : memref<22xf32, #tpu.memory_space<smem>>
    %c4 = arith.constant 4 : index
    %4 = memref.load %arg1[%c4] : memref<22xf32, #tpu.memory_space<smem>>
    %c3 = arith.constant 3 : index
    %5 = memref.load %arg1[%c3] : memref<22xf32, #tpu.memory_space<smem>>
    %c2 = arith.constant 2 : index
    %6 = memref.load %arg1[%c2] : memref<22xf32, #tpu.memory_space<smem>>
    %c1 = arith.constant 1 : index
    %7 = memref.load %arg1[%c1] : memref<22xf32, #tpu.memory_space<smem>>
    %c0 = arith.constant 0 : index
    %8 = memref.load %arg1[%c0] : memref<22xf32, #tpu.memory_space<smem>>
    %c9 = arith.constant 9 : index
    %9 = memref.load %arg1[%c9] : memref<22xf32, #tpu.memory_space<smem>>
    %c10 = arith.constant 10 : index
    %10 = memref.load %arg1[%c10] : memref<22xf32, #tpu.memory_space<smem>>
    %c11 = arith.constant 11 : index
    %11 = memref.load %arg1[%c11] : memref<22xf32, #tpu.memory_space<smem>>
    %c12 = arith.constant 12 : index
    %12 = memref.load %arg1[%c12] : memref<22xf32, #tpu.memory_space<smem>>
    %c13 = arith.constant 13 : index
    %13 = memref.load %arg1[%c13] : memref<22xf32, #tpu.memory_space<smem>>
    %c14 = arith.constant 14 : index
    %14 = memref.load %arg1[%c14] : memref<22xf32, #tpu.memory_space<smem>>
    %c15 = arith.constant 15 : index
    %15 = memref.load %arg1[%c15] : memref<22xf32, #tpu.memory_space<smem>>
    %c16 = arith.constant 16 : index
    %16 = memref.load %arg1[%c16] : memref<22xf32, #tpu.memory_space<smem>>
    %c17 = arith.constant 17 : index
    %17 = memref.load %arg1[%c17] : memref<22xf32, #tpu.memory_space<smem>>
    %c18 = arith.constant 18 : index
    %18 = memref.load %arg1[%c18] : memref<22xf32, #tpu.memory_space<smem>>
    %c19 = arith.constant 19 : index
    %19 = memref.load %arg1[%c19] : memref<22xf32, #tpu.memory_space<smem>>
    %c20 = arith.constant 20 : index
    %20 = memref.load %arg1[%c20] : memref<22xf32, #tpu.memory_space<smem>>
    %c21 = arith.constant 21 : index
    %21 = memref.load %arg1[%c21] : memref<22xf32, #tpu.memory_space<smem>>
    %22 = tpu.iota {dimensions = array<i32: 0>} : vector<8x128xi32>
    %23 = tpu.iota {dimensions = array<i32: 1>} : vector<8x128xi32>
    %c5_i32 = arith.constant 5 : i32
    %24 = vector.broadcast %c5_i32 : i32 to vector<8x128xi32>
    %25 = arith.cmpi slt, %22, %24 : vector<8x128xi32>
    %c5_i32_0 = arith.constant 5 : i32
    %26 = vector.broadcast %c5_i32_0 : i32 to vector<8x128xi32>
    %27 = arith.cmpi slt, %23, %26 : vector<8x128xi32>
    %28 = arith.andi %25, %27 : vector<8x128xi1>
    %c6_i32 = arith.constant 6 : i32
    %29 = vector.broadcast %c6_i32 : i32 to vector<8x128xi32>
    %30 = arith.cmpi slt, %22, %29 : vector<8x128xi32>
    %c6_i32_1 = arith.constant 6 : i32
    %31 = vector.broadcast %c6_i32_1 : i32 to vector<8x128xi32>
    %32 = arith.cmpi slt, %23, %31 : vector<8x128xi32>
    %33 = arith.andi %30, %32 : vector<8x128xi1>
    %cst = arith.constant 0.000000e+00 : f32
    %34 = vector.broadcast %cst : f32 to vector<8x128xf32>
    %c0_2 = arith.constant 0 : index
    %c0_3 = arith.constant 0 : index
    %35 = vector.load %arg2[%c0_2, %c0_3] : memref<8x128xf32, #tpu.memory_space<vmem>>, vector<8x128xf32>
    tpu.vector_store %arg2[%c0_2, %c0_3], %34 {strides = array<i32>} : memref<8x128xf32, #tpu.memory_space<vmem>>, vector<8x128xf32>,
    %c0_4 = arith.constant 0 : index
    %c0_5 = arith.constant 0 : index
    %36 = vector.load %arg0[%c0_4, %c0_5] : memref<4x4xf32, #tpu.memory_space<vmem>>, vector<4x4xf32>
    %c0_6 = arith.constant 0 : index
    %c0_7 = arith.constant 0 : index
    %37 = vector.load %arg2[%c0_6, %c0_7] : memref<8x128xf32, #tpu.memory_space<vmem>>, vector<4x4xf32>
    tpu.vector_store %arg2[%c0_6, %c0_7], %36 {strides = array<i32>} : memref<8x128xf32, #tpu.memory_space<vmem>>, vector<4x4xf32>,
    %c0_8 = arith.constant 0 : index
    %c0_9 = arith.constant 0 : index
    %38 = vector.load %arg2[%c0_8, %c0_9] : memref<8x128xf32, #tpu.memory_space<vmem>>, vector<8x128xf32>
    %c1_i32 = arith.constant 1 : i32
    %39 = tpu.dynamic_rotate %38 by %c1_i32 dim 0 : vector<8x128xf32>, i32 -> vector<8x128xf32>
    %c1_i32_10 = arith.constant 1 : i32
    %40 = tpu.dynamic_rotate %39 by %c1_i32_10 dim 1 : vector<8x128xf32>, i32 -> vector<8x128xf32>
    %41 = vector.broadcast %0 : f32 to vector<8x128xf32>
    %42 = arith.mulf %41, %40 : vector<8x128xf32>
    %43 = vector.broadcast %1 : f32 to vector<8x128xf32>
    %44 = arith.mulf %43, %39 : vector<8x128xf32>
    %45 = arith.addf %42, %44 : vector<8x128xf32>
    %c127_i32 = arith.constant 127 : i32
    %46 = tpu.dynamic_rotate %39 by %c127_i32 dim 1 : vector<8x128xf32>, i32 -> vector<8x128xf32>
    %47 = vector.broadcast %2 : f32 to vector<8x128xf32>
    %48 = arith.mulf %47, %46 : vector<8x128xf32>
    %49 = arith.addf %45, %48 : vector<8x128xf32>
    %c1_i32_11 = arith.constant 1 : i32
    %50 = tpu.dynamic_rotate %38 by %c1_i32_11 dim 1 : vector<8x128xf32>, i32 -> vector<8x128xf32>
    %51 = vector.broadcast %3 : f32 to vector<8x128xf32>
    %52 = arith.mulf %51, %50 : vector<8x128xf32>
    %53 = arith.addf %49, %52 : vector<8x128xf32>
    %54 = vector.broadcast %4 : f32 to vector<8x128xf32>
    %55 = arith.mulf %54, %38 : vector<8x128xf32>
    %56 = arith.addf %53, %55 : vector<8x128xf32>
    %c127_i32_12 = arith.constant 127 : i32
    %57 = tpu.dynamic_rotate %38 by %c127_i32_12 dim 1 : vector<8x128xf32>, i32 -> vector<8x128xf32>
    %58 = vector.broadcast %5 : f32 to vector<8x128xf32>
    %59 = arith.mulf %58, %57 : vector<8x128xf32>
    %60 = arith.addf %56, %59 : vector<8x128xf32>
    %c7_i32 = arith.constant 7 : i32
    %61 = tpu.dynamic_rotate %38 by %c7_i32 dim 0 : vector<8x128xf32>, i32 -> vector<8x128xf32>
    %c1_i32_13 = arith.constant 1 : i32
    %62 = tpu.dynamic_rotate %61 by %c1_i32_13 dim 1 : vector<8x128xf32>, i32 -> vector<8x128xf32>
    %63 = vector.broadcast %6 : f32 to vector<8x128xf32>
    %64 = arith.mulf %63, %62 : vector<8x128xf32>
    %65 = arith.addf %60, %64 : vector<8x128xf32>
    %66 = vector.broadcast %7 : f32 to vector<8x128xf32>
    %67 = arith.mulf %66, %61 : vector<8x128xf32>
    %68 = arith.addf %65, %67 : vector<8x128xf32>
    %c127_i32_14 = arith.constant 127 : i32
    %69 = tpu.dynamic_rotate %61 by %c127_i32_14 dim 1 : vector<8x128xf32>, i32 -> vector<8x128xf32>
    %70 = vector.broadcast %8 : f32 to vector<8x128xf32>
    %71 = arith.mulf %70, %69 : vector<8x128xf32>
    %72 = arith.addf %68, %71 : vector<8x128xf32>
    %73 = vector.broadcast %18 : f32 to vector<8x128xf32>
    %74 = arith.addf %72, %73 : vector<8x128xf32>
    %cst_15 = arith.constant 0.000000e+00 : f32
    %75 = vector.broadcast %cst_15 : f32 to vector<8x128xf32>
    %76 = arith.select %28, %74, %75 : vector<8x128xi1>, vector<8x128xf32>
    %77 = vector.shape_cast %76 : vector<8x128xf32> to vector<1x8x128xf32>
    %cst_16 = arith.constant dense<0.000000e+00> : vector<1xf32>
    %78 = vector.multi_reduction <add>, %77, %cst_16 [1, 2] : vector<1x8x128xf32> to vector<1xf32>
    %79 = vector.shape_cast %78 : vector<1xf32> to vector<1x1x1xf32>
    %80 = vector.extract %79[0, 0, 0] : f32 from vector<1x1x1xf32>
    %81 = arith.mulf %76, %76 : vector<8x128xf32>
    %82 = vector.shape_cast %81 : vector<8x128xf32> to vector<1x8x128xf32>
    %cst_17 = arith.constant dense<0.000000e+00> : vector<1xf32>
    %83 = vector.multi_reduction <add>, %82, %cst_17 [1, 2] : vector<1x8x128xf32> to vector<1xf32>
    %84 = vector.shape_cast %83 : vector<1xf32> to vector<1x1x1xf32>
    %85 = vector.extract %84[0, 0, 0] : f32 from vector<1x1x1xf32>
    %cst_18 = arith.constant 4.000000e-02 : f32
    %86 = arith.mulf %80, %cst_18 : f32
    %cst_19 = arith.constant 4.000000e-02 : f32
    %87 = arith.mulf %85, %cst_19 : f32
    %88 = arith.mulf %86, %86 : f32
    %89 = arith.subf %87, %88 : f32
    %cst_20 = arith.constant 9.99999974E-6 : f32
    %90 = arith.addf %89, %cst_20 : f32
    %91 = math.rsqrt %90 : f32
    %92 = arith.mulf %91, %20 : f32
    %93 = arith.mulf %86, %92 : f32
    %94 = arith.subf %21, %93 : f32
    %95 = vector.broadcast %92 : f32 to vector<8x128xf32>
    %96 = arith.mulf %76, %95 : vector<8x128xf32>
    %97 = vector.broadcast %94 : f32 to vector<8x128xf32>
    %98 = arith.addf %96, %97 : vector<8x128xf32>
    %cst_21 = arith.constant 0.000000e+00 : f32
    %99 = vector.broadcast %cst_21 : f32 to vector<8x128xf32>
    %100 = arith.select %28, %98, %99 : vector<8x128xi1>, vector<8x128xf32>
    %c1_i32_22 = arith.constant 1 : i32
    %101 = tpu.dynamic_rotate %100 by %c1_i32_22 dim 0 : vector<8x128xf32>, i32 -> vector<8x128xf32>
    %c1_i32_23 = arith.constant 1 : i32
    %102 = tpu.dynamic_rotate %101 by %c1_i32_23 dim 1 : vector<8x128xf32>, i32 -> vector<8x128xf32>
    %103 = vector.broadcast %9 : f32 to vector<8x128xf32>
    %104 = arith.mulf %103, %102 : vector<8x128xf32>
    %105 = vector.broadcast %10 : f32 to vector<8x128xf32>
    %106 = arith.mulf %105, %101 : vector<8x128xf32>
    %107 = arith.addf %104, %106 : vector<8x128xf32>
    %c127_i32_24 = arith.constant 127 : i32
    %108 = tpu.dynamic_rotate %101 by %c127_i32_24 dim 1 : vector<8x128xf32>, i32 -> vector<8x128xf32>
    %109 = vector.broadcast %11 : f32 to vector<8x128xf32>
    %110 = arith.mulf %109, %108 : vector<8x128xf32>
    %111 = arith.addf %107, %110 : vector<8x128xf32>
    %c1_i32_25 = arith.constant 1 : i32
    %112 = tpu.dynamic_rotate %100 by %c1_i32_25 dim 1 : vector<8x128xf32>, i32 -> vector<8x128xf32>
    %113 = vector.broadcast %12 : f32 to vector<8x128xf32>
    %114 = arith.mulf %113, %112 : vector<8x128xf32>
    %115 = arith.addf %111, %114 : vector<8x128xf32>
    %116 = vector.broadcast %13 : f32 to vector<8x128xf32>
    %117 = arith.mulf %116, %100 : vector<8x128xf32>
    %118 = arith.addf %115, %117 : vector<8x128xf32>
    %c127_i32_26 = arith.constant 127 : i32
    %119 = tpu.dynamic_rotate %100 by %c127_i32_26 dim 1 : vector<8x128xf32>, i32 -> vector<8x128xf32>
    %120 = vector.broadcast %14 : f32 to vector<8x128xf32>
    %121 = arith.mulf %120, %119 : vector<8x128xf32>
    %122 = arith.addf %118, %121 : vector<8x128xf32>
    %c7_i32_27 = arith.constant 7 : i32
    %123 = tpu.dynamic_rotate %100 by %c7_i32_27 dim 0 : vector<8x128xf32>, i32 -> vector<8x128xf32>
    %c1_i32_28 = arith.constant 1 : i32
    %124 = tpu.dynamic_rotate %123 by %c1_i32_28 dim 1 : vector<8x128xf32>, i32 -> vector<8x128xf32>
    %125 = vector.broadcast %15 : f32 to vector<8x128xf32>
    %126 = arith.mulf %125, %124 : vector<8x128xf32>
    %127 = arith.addf %122, %126 : vector<8x128xf32>
    %128 = vector.broadcast %16 : f32 to vector<8x128xf32>
    %129 = arith.mulf %128, %123 : vector<8x128xf32>
    %130 = arith.addf %127, %129 : vector<8x128xf32>
    %c127_i32_29 = arith.constant 127 : i32
    %131 = tpu.dynamic_rotate %123 by %c127_i32_29 dim 1 : vector<8x128xf32>, i32 -> vector<8x128xf32>
    %132 = vector.broadcast %17 : f32 to vector<8x128xf32>
    %133 = arith.mulf %132, %131 : vector<8x128xf32>
    %134 = arith.addf %130, %133 : vector<8x128xf32>
    %135 = vector.broadcast %19 : f32 to vector<8x128xf32>
    %136 = arith.addf %134, %135 : vector<8x128xf32>
    %cst_30 = arith.constant 0.000000e+00 : f32
    %137 = vector.broadcast %cst_30 : f32 to vector<8x128xf32>
    %138 = arith.select %28, %136, %137 : vector<8x128xi1>, vector<8x128xf32>
    %c1_i32_31 = arith.constant 1 : i32
    %139 = tpu.dynamic_rotate %138 by %c1_i32_31 dim 0 : vector<8x128xf32>, i32 -> vector<8x128xf32>
    %c1_i32_32 = arith.constant 1 : i32
    %140 = tpu.dynamic_rotate %139 by %c1_i32_32 dim 1 : vector<8x128xf32>, i32 -> vector<8x128xf32>
    %141 = vector.broadcast %0 : f32 to vector<8x128xf32>
    %142 = arith.mulf %141, %140 : vector<8x128xf32>
    %143 = vector.broadcast %1 : f32 to vector<8x128xf32>
    %144 = arith.mulf %143, %139 : vector<8x128xf32>
    %145 = arith.addf %142, %144 : vector<8x128xf32>
    %c127_i32_33 = arith.constant 127 : i32
    %146 = tpu.dynamic_rotate %139 by %c127_i32_33 dim 1 : vector<8x128xf32>, i32 -> vector<8x128xf32>
    %147 = vector.broadcast %2 : f32 to vector<8x128xf32>
    %148 = arith.mulf %147, %146 : vector<8x128xf32>
    %149 = arith.addf %145, %148 : vector<8x128xf32>
    %c1_i32_34 = arith.constant 1 : i32
    %150 = tpu.dynamic_rotate %138 by %c1_i32_34 dim 1 : vector<8x128xf32>, i32 -> vector<8x128xf32>
    %151 = vector.broadcast %3 : f32 to vector<8x128xf32>
    %152 = arith.mulf %151, %150 : vector<8x128xf32>
    %153 = arith.addf %149, %152 : vector<8x128xf32>
    %154 = vector.broadcast %4 : f32 to vector<8x128xf32>
    %155 = arith.mulf %154, %138 : vector<8x128xf32>
    %156 = arith.addf %153, %155 : vector<8x128xf32>
    %c127_i32_35 = arith.constant 127 : i32
    %157 = tpu.dynamic_rotate %138 by %c127_i32_35 dim 1 : vector<8x128xf32>, i32 -> vector<8x128xf32>
    %158 = vector.broadcast %5 : f32 to vector<8x128xf32>
    %159 = arith.mulf %158, %157 : vector<8x128xf32>
    %160 = arith.addf %156, %159 : vector<8x128xf32>
    %c7_i32_36 = arith.constant 7 : i32
    %161 = tpu.dynamic_rotate %138 by %c7_i32_36 dim 0 : vector<8x128xf32>, i32 -> vector<8x128xf32>
    %c1_i32_37 = arith.constant 1 : i32
    %162 = tpu.dynamic_rotate %161 by %c1_i32_37 dim 1 : vector<8x128xf32>, i32 -> vector<8x128xf32>
    %163 = vector.broadcast %6 : f32 to vector<8x128xf32>
    %164 = arith.mulf %163, %162 : vector<8x128xf32>
    %165 = arith.addf %160, %164 : vector<8x128xf32>
    %166 = vector.broadcast %7 : f32 to vector<8x128xf32>
    %167 = arith.mulf %166, %161 : vector<8x128xf32>
    %168 = arith.addf %165, %167 : vector<8x128xf32>
    %c127_i32_38 = arith.constant 127 : i32
    %169 = tpu.dynamic_rotate %161 by %c127_i32_38 dim 1 : vector<8x128xf32>, i32 -> vector<8x128xf32>
    %170 = vector.broadcast %8 : f32 to vector<8x128xf32>
    %171 = arith.mulf %170, %169 : vector<8x128xf32>
    %172 = arith.addf %168, %171 : vector<8x128xf32>
    %173 = vector.broadcast %18 : f32 to vector<8x128xf32>
    %174 = arith.addf %172, %173 : vector<8x128xf32>
    %cst_39 = arith.constant 0.000000e+00 : f32
    %175 = vector.broadcast %cst_39 : f32 to vector<8x128xf32>
    %176 = arith.select %33, %174, %175 : vector<8x128xi1>, vector<8x128xf32>
    %c0_40 = arith.constant 0 : index
    %c0_41 = arith.constant 0 : index
    %177 = vector.load %arg2[%c0_40, %c0_41] : memref<8x128xf32, #tpu.memory_space<vmem>>, vector<8x128xf32>
    tpu.vector_store %arg2[%c0_40, %c0_41], %176 {strides = array<i32>} : memref<8x128xf32, #tpu.memory_space<vmem>>, vector<8x128xf32>,
    return
  }
}

</mosaic_0001>

<bundles_post_ra>
// kernel: _model_forward.1
= control target key start
LH: loop header
LB: loop body
LE: loop exit
PB: predicated region body
PF: predicated region fallthrough
CT: control target
= control target key end

     0   :  { %7 = vsyncpa [#allocation3], 0  ;;  %s446_s0 = inlined_call_operand.hbm [shape: f32[4,4], index: 0, kind: input, shape index: {}]   ;;  %s447_s1 = inlined_call_operand.vmem [shape: f32[22], index: 1, kind: input, shape index: {}]   ;;  %s448_s2 = inlined_call_operand.vmem [shape: f32[8,128], index: 2, kind: output, shape index: {}]  }
   0x1   :  { %8 = vsyncpa [#allocation4], 0  ;;  %s25_s11 = sshll.u32 %s447_s1, 4  ;;  %s304_s12 = smov [#allocation2]   ;;  %s26_s11 = int_to_ptr.vmem [resolvable:$true] %s25_s11 }
   0x2   :  { %s15_s13 = sshll.u32 %s304_s12, 4  ;;  %s16_s13 = int_to_ptr.vmem [resolvable:$true] %s15_s13 }
   0x3   :  { %s276_s14 = scalar_lea.vmem %s16_s13, 64  ;;  %p281_p1 = scmp.lt.s32.totalorder %s16_s13, %s16_s13 }
   0x4   :  { %p277_p0 = scmp.ne.s32.totalorder %s16_s13, %s276_s14  ;;  %p282_p2 = scmp.lt.s32.totalorder %s276_s14, %s276_s14 }
   0x6   :  { %p283_p3 = por %p282_p2, %p281_p1 }
   0x8   :  { %p284_p4 = pnand %p283_p3, %p277_p0 }
   0xa   :  { %287 = shalt.err (!%p284_p4)
}
   0xb   :  { %18 = dma.hbm_to_vmem [thread:$0]  %s446_s0, 64, %s16_s13, [#allocation3]  }
   0xc   :  { %s288_s17 = scalar_lea.vmem %s26_s11, 16  ;;  %p293_p6 = scmp.lt.s32.totalorder %s26_s11, %s26_s11 }
   0xd   :  { %p289_p5 = scmp.ne.s32.totalorder %s26_s11, %s288_s17  ;;  %p294_p7 = scmp.lt.s32.totalorder %s288_s17, %s288_s17 }
   0xf   :  { %p295_p8 = por %p294_p7, %p293_p6 }
  0x11   :  { %p296_p9 = pnand %p295_p8, %p289_p5 }
  0x13   :  { %299 = shalt.err (!%p296_p9)
}
  0x14   :  { %s305_s1 = smov [#allocation5]  }
  0x15   :  { %28 = dma.vmem_to_smem %s26_s11, 16, %s305_s1, [#allocation4]  }
  0x16   :  { %300 = dma.done.wait [#allocation3], 64  }
  0x17   :  { %301 = vsyncadd [#allocation3], 4294967232 }
  0x18   :  { %302 = dma.done.wait [#allocation4], 16  }
  0x19   :  { %303 = vsyncadd [#allocation4], 4294967280 }
  0x1a   :  { %35 = sfence }
  0x1b   :  { %v69_v0 = vld [vmem:[#allocation2] sm:$0xf]  ;;  %vm70_vm0 = vcmask 27648   ;;  %v306_v1 = vmov 0.0   ;;  %s307_s23 = smov 1   ;;  %s308_s24 = smov 127   ;;  %v58_v4 = vlaneseq }
  0x1c   :  { %68 = vst [vmem:[%s448_s2] sm:$0xff] %v306_v1  ;;  %s349_s25 = sld [smem:[#allocation5 + $0x8]] }
  0x1d   :  { %71 = vst.msk [vmem:[%s448_s2] sm:$0xf] %vm70_vm0, %v69_v0  ;;  %v59_v6 = vshrl.u32 %v58_v4, 7  ;;  %v61_v7 = vand.u32 127, %v58_v4  ;;  %s351_s26 = sld [smem:[#allocation5 + $0x7]] }
  0x1e   :  { %s353_s27 = sld [smem:[#allocation5 + $0x6]] }
  0x1f   :  { %vm65_vm1 = vcmp.lt.s32.totalorder %v59_v6, 6  ;;  %vm66_vm2 = vcmp.lt.s32.totalorder %v61_v7, 6  ;;  %s355_s28 = sld [smem:[#allocation5 + $0x5]]  ;;  %vm62_vm4 = vcmp.lt.s32.totalorder %v59_v6, 5  ;;  %vm63_vm5 = vcmp.lt.s32.totalorder %v61_v7, 5 }
  0x20   :  { %vm345_vm3 = vmand %vm65_vm1, %vm66_vm2  ;;  %s357_s29 = sld [smem:[#allocation5 + $0x4]] }
  0x21   :  { %s361_s30 = sld [smem:[#allocation5 + $0x3]]  ;;  %vm397_vm6 = vmand %vm62_vm4, %vm63_vm5 }
  0x22   :  { %v76_v9 = vstv %s349_s25  ;;  %s363_s3 = sld [smem:[#allocation5 + $0x2]] }
  0x23   :  { %v78_v10 = vstv %s351_s26  ;;  %s371_s4 = sld [smem:[#allocation5 + $0x1]] }
  0x24   :  { %v72_v2 = vld [vmem:[%s448_s2] sm:$0xff]  ;;  %v83_v15 = vstv %s353_s27  ;;  %s374_s5 = sld [smem:[#allocation5]] }
  0x25   :  { %v73_v3 = vrot.slane %v72_v2, 7  ;;  %86 = vrot.lane.b32.xlu1 %v72_v2, %s307_s23  ;;  %v99_v5 = vrot.slane %v72_v2, 1  ;;  %v88_v16 = vstv %s355_s28  ;;  %s387_s6 = sld [smem:[#allocation5 + $0x12]] }
  0x26   :  { %v91_v18 = vstv %s357_s29  ;;  %s253_s14 = sld [smem:[#allocation5 + $0x14]] }
  0x27   :  { %74 = vrot.lane.b32.xlu0 %v73_v3, %s307_s23  ;;  %v79_v14 = vmul.f32 %v78_v10, %v73_v3  ;;  %v96_v23 = vstv %s361_s30  ;;  %v92_v25 = vmul.f32 %v91_v18, %v72_v2  ;;  %s254_s15 = sld [smem:[#allocation5 + $0x15]] }
  0x28   :  { %v102_v27 = vstv %s363_s3  ;;  %s243_s19 = sld [smem:[#allocation5 + $0xa]] }
  0x29   :  { %94 = vrot.lane.b32.xlu1 %v72_v2, %s308_s24  ;;  %v105_v30 = vstv %s371_s4  ;;  %s242_s0 = sld [smem:[#allocation5 + $0x9]] }
  0x2a   :  { %v110_v34 = vstv %s374_s5  ;;  %v106_v36 = vmul.f32 %v105_v30, %v99_v5  ;;  %s244_s20 = sld [smem:[#allocation5 + $0xb]] }
  0x2b   :  { %81 = vrot.lane.b32.xlu0 %v73_v3, %s308_s24  ;;  %v113_v40 = vstv %s387_s6  ;;  %s245_s21 = sld [smem:[#allocation5 + $0xc]] }
  0x2c   :  { %s246_s22 = sld [smem:[#allocation5 + $0xd]] }
  0x2d   :  { %108 = vrot.lane.b32.xlu1 %v99_v5, %s308_s24 }
  0x2e   :  { %v156_v6 = vstv %s243_s19 }
  0x2f   :  { %100 = vrot.lane.b32.xlu0 %v99_v5, %s307_s23  ;;  %v154_v5 = vstv %s242_s0 }
  0x30   :  { %v161_v7 = vstv %s244_s20 }
  0x97   :  { %v87_v12 = vpop.permute.xlu1 %86 }
  0x98   :  { %v89_v21 = vmul.f32 %v88_v16, %v87_v12 }
  0x99   :  { %v75_v11 = vpop.permute.xlu0 %74 }
  0x9a   :  { %v77_v13 = vmul.f32 %v76_v9, %v75_v11 }
  0x9b   :  { %v95_v22 = vpop.permute.xlu1 %94 }
  0x9c   :  { %v80_v19 = vadd.f32 %v79_v14, %v77_v13  ;;  %v97_v29 = vmul.f32 %v96_v23, %v95_v22 }
  0x9d   :  { %v82_v17 = vpop.permute.xlu0 %81 }
  0x9e   :  { %v84_v20 = vmul.f32 %v83_v15, %v82_v17  ;;  %v166_v17 = vstv %s245_s21 }
  0x9f   :  { %v109_v33 = vpop.permute.xlu1 %108 }
  0xa0   :  { %v85_v24 = vadd.f32 %v84_v20, %v80_v19  ;;  %v111_v38 = vmul.f32 %v110_v34, %v109_v33 }
  0xa1   :  { %v101_v26 = vpop.permute.xlu0 %100 }
  0xa2   :  { %v90_v28 = vadd.f32 %v89_v21, %v85_v24  ;;  %v103_v32 = vmul.f32 %v102_v27, %v101_v26  ;;  %v169_v21 = vstv %s246_s22 }
  0xa4   :  { %v93_v31 = vadd.f32 %v92_v25, %v90_v28 }
  0xa6   :  { %v98_v35 = vadd.f32 %v97_v29, %v93_v31 }
  0xa8   :  { %v104_v37 = vadd.f32 %v103_v32, %v98_v35 }
  0xaa   :  { %v107_v39 = vadd.f32 %v106_v36, %v104_v37 }
  0xac   :  { %v112_v41 = vadd.f32 %v111_v38, %v107_v39 }
  0xae   :  { %v114_v43 = vadd.f32 %v113_v40, %v112_v41 }
  0xb0   :  { %v115_v44 = vsel %vm397_vm6, %v114_v43, 0.0 }
  0xb1   :  { %116 = vadd.xlane.f32.xlu0 %v115_v44  ;;  %v125_v45 = vmul.f32 %v115_v44, %v115_v44 }
  0xb3   :  { %126 = vadd.xlane.f32.xlu1 %v125_v45 }
 0x13a   :  { %v117_v46 = vpop.xlane.xlu0 %116 }
 0x13b   :  { %v118_v47 = vrot.slane %v117_v46, 4 }
 0x13c   :  { %v127_v48 = vpop.xlane.xlu1 %126 }
 0x13d   :  { %v119_v49 = vadd.f32 %v118_v47, %v117_v46  ;;  %v128_v50 = vrot.slane %v127_v48, 4 }
 0x13f   :  { %v120_v51 = vrot.slane %v119_v49, 2  ;;  %v129_v52 = vadd.f32 %v128_v50, %v127_v48 }
 0x141   :  { %v130_v53 = vrot.slane %v129_v52, 2  ;;  %v121_v54 = vadd.f32 %v120_v51, %v119_v49 }
 0x143   :  { %v122_v55 = vrot.slane %v121_v54, 1  ;;  %v131_v56 = vadd.f32 %v130_v53, %v129_v52 }
 0x145   :  { %v123_v57 = vadd.f32 %v122_v55, %v121_v54  ;;  %v132_v58 = vrot.slane %v131_v56, 1 }
 0x147   :  { %255 = vpush %v123_v57  ;;  %v133_v59 = vadd.f32 %v132_v58, %v131_v56 }
 0x149   :  { %257 = vpush %v133_v59 }
 0x178   :  { %s256_s7 = spop %255 }
 0x179   :  { %s135_s8 = smul.f32 0.04, %s256_s7  ;;  %s247_s7 = sld [smem:[#allocation5 + $0xe]] }
 0x17a   :  { %s258_s9 = spop %257 }
 0x17b   :  { %s137_s10 = smul.f32 %s135_s8, %s135_s8 }
 0x17c   :  { %s136_s11 = smul.f32 0.04, %s258_s9  ;;  %s249_s9 = sld [smem:[#allocation5 + $0x10]] }
 0x17e   :  { %s138_s12 = ssub.f32 %s136_s11, %s137_s10 }
 0x17f   :  { %s250_s10 = sld [smem:[#allocation5 + $0x11]]  ;;  %v174_v26 = vstv %s247_s7 }
 0x180   :  { %s139_s13 = sadd.f32 1e-05, %s138_s12 }
 0x181   :  { %s252_s11 = sld [smem:[#allocation5 + $0x13]] }
 0x182   :  { %v140_v60 = vstv %s139_s13  ;;  %v183_v37 = vstv %s249_s9 }
 0x183   :  { %266 = vrsqrt.f32 %v140_v60 }
 0x185   :  { %v188_v41 = vstv %s250_s10 }
 0x187   :  { %v191_v48 = vstv %s252_s11 }
 0x190   :  { %v267_v61 = vpop.eup %266 }
 0x191   :  { %259 = vpush %v267_v61 }
 0x1c2   :  { %s260_s16 = spop %259 }
 0x1c3   :  { %s143_s17 = smul.f32 %s260_s16, %s253_s14 }
 0x1c5   :  { %s144_s1 = smul.f32 %s143_s17, %s135_s8  ;;  %v146_v62 = vstv %s143_s17  ;;  %s248_s8 = sld [smem:[#allocation5 + $0xf]] }
 0x1c6   :  { %v147_v63 = vmul.f32 %v146_v62, %v115_v44 }
 0x1c7   :  { %s145_s18 = ssub.f32 %s254_s15, %s144_s1 }
 0x1c9   :  { %v148_v0 = vstv %s145_s18 }
 0x1ca   :  { %v149_v1 = vadd.f32 %v148_v0, %v147_v63 }
 0x1cb   :  { %v180_v32 = vstv %s248_s8 }
 0x1cc   :  { %v150_v2 = vsel %vm397_vm6, %v149_v1, 0.0 }
 0x1cd   :  { %v151_v3 = vrot.slane %v150_v2, 7  ;;  %v177_v4 = vrot.slane %v150_v2, 1  ;;  %v170_v29 = vmul.f32 %v169_v21, %v150_v2 }
 0x1cf   :  { %159 = vrot.lane.b32.xlu1 %v151_v3, %s308_s24  ;;  %152 = vrot.lane.b32.xlu0 %v151_v3, %s307_s23  ;;  %v157_v14 = vmul.f32 %v156_v6, %v151_v3  ;;  %v184_v44 = vmul.f32 %v183_v37, %v177_v4 }
 0x1d3   :  { %172 = vrot.lane.b32.xlu1 %v150_v2, %s308_s24  ;;  %164 = vrot.lane.b32.xlu0 %v150_v2, %s307_s23 }
 0x1d7   :  { %186 = vrot.lane.b32.xlu1 %v177_v4, %s308_s24  ;;  %178 = vrot.lane.b32.xlu0 %v177_v4, %s307_s23 }
 0x241   :  { %v160_v11 = vpop.permute.xlu1 %159  ;;  %v153_v12 = vpop.permute.xlu0 %152 }
 0x242   :  { %v155_v13 = vmul.f32 %v154_v5, %v153_v12  ;;  %v162_v19 = vmul.f32 %v161_v7, %v160_v11 }
 0x244   :  { %v158_v20 = vadd.f32 %v157_v14, %v155_v13 }
 0x245   :  { %v165_v22 = vpop.permute.xlu0 %164  ;;  %v173_v28 = vpop.permute.xlu1 %172 }
 0x246   :  { %v163_v24 = vadd.f32 %v162_v19, %v158_v20  ;;  %v167_v25 = vmul.f32 %v166_v17, %v165_v22  ;;  %v175_v35 = vmul.f32 %v174_v26, %v173_v28 }
 0x248   :  { %v168_v31 = vadd.f32 %v167_v25, %v163_v24 }
 0x249   :  { %v179_v33 = vpop.permute.xlu0 %178  ;;  %v187_v43 = vpop.permute.xlu1 %186 }
 0x24a   :  { %v171_v36 = vadd.f32 %v170_v29, %v168_v31  ;;  %v181_v39 = vmul.f32 %v180_v32, %v179_v33  ;;  %v189_v46 = vmul.f32 %v188_v41, %v187_v43 }
 0x24c   :  { %v176_v38 = vadd.f32 %v175_v35, %v171_v36 }
 0x24e   :  { %v182_v45 = vadd.f32 %v181_v39, %v176_v38 }
 0x250   :  { %v185_v47 = vadd.f32 %v184_v44, %v182_v45 }
 0x252   :  { %v190_v49 = vadd.f32 %v189_v46, %v185_v47 }
 0x254   :  { %v192_v50 = vadd.f32 %v191_v48, %v190_v49 }
 0x256   :  { %v193_v51 = vsel %vm397_vm6, %v192_v50, 0.0 }
 0x257   :  { %v194_v52 = vrot.slane %v193_v51, 7  ;;  %v214_v53 = vrot.slane %v193_v51, 1  ;;  %v208_v63 = vmul.f32 %v193_v51, %v91_v18 }
 0x259   :  { %200 = vrot.lane.b32.xlu1 %v194_v52, %s308_s24  ;;  %195 = vrot.lane.b32.xlu0 %v194_v52, %s307_s23  ;;  %v198_v56 = vmul.f32 %v194_v52, %v78_v10 }
 0x25d   :  { %210 = vrot.lane.b32.xlu1 %v193_v51, %s308_s24  ;;  %204 = vrot.lane.b32.xlu0 %v193_v51, %s307_s23 }
 0x261   :  { %221 = vrot.lane.b32.xlu1 %v214_v53, %s308_s24  ;;  %215 = vrot.lane.b32.xlu0 %v214_v53, %s307_s23 }
 0x2cb   :  { %v201_v54 = vpop.permute.xlu1 %200  ;;  %v196_v42 = vpop.permute.xlu0 %195 }
 0x2cc   :  { %v197_v55 = vmul.f32 %v196_v42, %v76_v9  ;;  %v202_v57 = vmul.f32 %v201_v54, %v83_v15  ;;  %v219_v15 = vmul.f32 %v214_v53, %v105_v30 }
 0x2ce   :  { %v199_v58 = vadd.f32 %v198_v56, %v197_v55 }
 0x2cf   :  { %v205_v59 = vpop.permute.xlu0 %204  ;;  %v211_v62 = vpop.permute.xlu1 %210 }
 0x2d0   :  { %v203_v60 = vadd.f32 %v202_v57, %v199_v58  ;;  %v206_v61 = vmul.f32 %v205_v59, %v88_v16  ;;  %v212_v2 = vmul.f32 %v211_v62, %v96_v23 }
 0x2d2   :  { %v207_v0 = vadd.f32 %v206_v61, %v203_v60 }
 0x2d3   :  { %v216_v1 = vpop.permute.xlu0 %215  ;;  %v222_v4 = vpop.permute.xlu1 %221 }
 0x2d4   :  { %v209_v9 = vadd.f32 %v208_v63, %v207_v0  ;;  %v217_v10 = vmul.f32 %v216_v1, %v102_v27  ;;  %v223_v6 = vmul.f32 %v222_v4, %v110_v34 }
 0x2d6   :  { %v213_v3 = vadd.f32 %v212_v2, %v209_v9 }
 0x2d8   :  { %v218_v5 = vadd.f32 %v217_v10, %v213_v3 }
 0x2da   :  { %v220_v7 = vadd.f32 %v219_v15, %v218_v5 }
 0x2dc   :  { %v224_v11 = vadd.f32 %v223_v6, %v220_v7 }
 0x2de   :  { %v225_v16 = vadd.f32 %v224_v11, %v113_v40 }
 0x2e0   :  { %v226_v18 = vsel %vm345_vm3, %v225_v16, 0.0 }
 0x2e1   :  { %227 = vst [vmem:[%s448_s2] sm:$0xff] %v226_v18 }
 0x2e2   :  { %232 = vsyncpa [#allocation3], 1 }
 0x2e3   :  { %233 = vsyncpa [#allocation4], 1 }

</bundles_post_ra>
